<compile_context>
chip_gen: v5e
topology: v5e:2x2
jax: 0.10.0
libtpu: 0.0.40
codegen_flags: <defaults>
</compile_context>

<pallas_src>
import jax
import jax.numpy as jnp
from jax.experimental import pallas as pl
from jax.experimental.pallas import tpu as pltpu


def _round_up(x: int, m: int) -> int:
    return ((x + m - 1) // m) * m


def _select_tm(M: int, tm_max: int) -> int:
    """256-aligned M tiles (v6e/v7x MXU + bf16 packing); >=2 tiles when M allows (v7x 2 TCs)."""
    if M < 256:
        return _round_up(M, 16)          # tiny inputs: one small tile, no huge zero-pad
    m256 = _round_up(M, 256)
    tm = min(tm_max, m256)
    if tm == m256 and m256 >= 512:       # would be a single tile -> split for the 2 v7x TCs
        half = m256 // 2
        tm = half if half % 256 == 0 else 256
    return tm


def _patch_embed_kernel_single(x_ref, w_ref, b_ref, o_ref):
    # Common case: whole K and whole D in one tile. Weight/bias blocks have constant
    # index_maps, so they stay resident in VMEM across all M tiles. No acc scratch needed.
    o_ref[...] = (
        jnp.dot(x_ref[...], w_ref[...], preferred_element_type=jnp.float32)
        + b_ref[...]
    ).astype(o_ref.dtype)


def _patch_embed_kernel_ktiled(x_ref, w_ref, b_ref, o_ref, acc_ref):
    # Fallback for very large K (= C * P**ndim): K-tiled with an f32 accumulator.
    k = pl.program_id(1)

    @pl.when(k == 0)
    def _():
        acc_ref[...] = jnp.zeros_like(acc_ref)

    acc_ref[...] += jnp.dot(x_ref[...], w_ref[...], preferred_element_type=jnp.float32)

    @pl.when(k == pl.num_programs(1) - 1)
    def _():
        o_ref[...] = (acc_ref[...] + b_ref[...]).astype(o_ref.dtype)


def patch_embedding_forward(x, weight, bias, patch_size, *, tm_max=1024, single_k_max=2048):
    """
    x:      (B, C, H, W)  NCHW, like the PyTorch module.
    weight: (D, C, P, P)  Conv2d weight (out_ch, in_ch, kh, kw).
    bias:   (D,)          Conv2d bias.
    returns (B, N, D) with N = (H//P)*(W//P)  -- matches rearrange "n l h w -> n (h w) l".
    """
    B, C, H, W = x.shape
    D = weight.shape[0]
    P = patch_size
    Hp, Wp = H // P, W // P
    N = Hp * Wp

    # --- patch extraction (reshape/transpose only; runs as XLA layout ops) ---
    # TODO(synk): fuse patch extraction into the kernel (BlockSpec over the NCHW rows +
    # in-VMEM (C,P,P) rearrange) to remove this extra HBM pass over the activations.
    xp = x.reshape(B, C, Hp, P, Wp, P)
    xp = jnp.transpose(xp, (0, 2, 4, 1, 3, 5))
    x_patches = xp.reshape(B * N, C * P * P)      # (M, K), K ordered (c, ph, pw)
    w_flat = weight.reshape(D, C * P * P).T       # (K, D), same K ordering

    M, K = x_patches.shape
    out_dtype = x.dtype
    in_dtype = jnp.bfloat16

    # --- tile selection: whole embedding dim as one tile, K collapsed when it fits ---
    Dp = _round_up(D, 128)
    Kp128 = _round_up(K, 128)
    single_k = Kp128 <= single_k_max
    tk = Kp128 if single_k else single_k_max
    Kp = _round_up(K, tk)
    tm = _select_tm(M, tm_max)
    Mp = _round_up(M, tm)

    # --- single fused cast + pad (skipped entirely when already tile-aligned) ---
    x_in = x_patches.astype(in_dtype)
    if (Mp, Kp) != (M, K):
        x_in = jnp.pad(x_in, ((0, Mp - M), (0, Kp - K)))
    w_in = w_flat.astype(in_dtype)
    if (Kp, Dp) != (K, D):
        w_in = jnp.pad(w_in, ((0, Kp - K), (0, Dp - D)))
    b_in = bias.astype(jnp.float32).reshape(1, D)
    if Dp != D:
        b_in = jnp.pad(b_in, ((0, 0), (0, Dp - D)))

    out_bytes = jnp.dtype(out_dtype).itemsize
    cost = pl.CostEstimate(
        flops=2 * M * K * D,
        transcendentals=0,
        bytes_accessed=M * K * 2 + K * D * 2 + M * D * out_bytes + D * 4,
    )

    # VMEM budget: double-buffered x/out tiles + resident weight (+ f32 acc in K-tiled path).
    working = (
        2 * tm * tk * 2            # x double-buffer (bf16)
        + 2 * Kp * Dp * 2          # weight (resident; budget 2 buffers)
        + 2 * Dp * 4               # bias
        + 2 * tm * Dp * out_bytes  # output double-buffer
        + (0 if single_k else tm * Dp * 4)
    )
    vmem_limit = int(min(48 * 1024 * 1024, max(32 * 1024 * 1024, working * 5 // 4)))

    if single_k:
        out_pad = pl.pallas_call(
            _patch_embed_kernel_single,
            out_shape=jax.ShapeDtypeStruct((Mp, Dp), out_dtype),
            grid_spec=pltpu.PrefetchScalarGridSpec(
                num_scalar_prefetch=0,
                grid=(Mp // tm,),
                in_specs=[
                    pl.BlockSpec((tm, Kp), lambda i: (i, 0)),
                    pl.BlockSpec((Kp, Dp), lambda i: (0, 0)),   # VMEM-resident weight
                    pl.BlockSpec((1, Dp), lambda i: (0, 0)),    # VMEM-resident bias
                ],
                out_specs=pl.BlockSpec((tm, Dp), lambda i: (i, 0)),
            ),
            compiler_params=pltpu.CompilerParams(
                dimension_semantics=("parallel",),
                vmem_limit_bytes=vmem_limit,
            ),
            cost_estimate=cost,
        )(x_in, w_in, b_in)
    else:
        out_pad = pl.pallas_call(
            _patch_embed_kernel_ktiled,
            out_shape=jax.ShapeDtypeStruct((Mp, Dp), out_dtype),
            grid_spec=pltpu.PrefetchScalarGridSpec(
                num_scalar_prefetch=0,
                grid=(Mp // tm, Kp // tk),
                in_specs=[
                    pl.BlockSpec((tm, tk), lambda i, k: (i, k)),
                    pl.BlockSpec((tk, Dp), lambda i, k: (k, 0)),
                    pl.BlockSpec((1, Dp), lambda i, k: (0, 0)),
                ],
                out_specs=pl.BlockSpec((tm, Dp), lambda i, k: (i, 0)),
                scratch_shapes=[pltpu.VMEM((tm, Dp), jnp.float32)],
            ),
            compiler_params=pltpu.CompilerParams(
                dimension_semantics=("parallel", "arbitrary"),
                vmem_limit_bytes=vmem_limit,
            ),
            cost_estimate=cost,
        )(x_in, w_in, b_in)

    out = out_pad if (Mp == M and Dp == D) else out_pad[:M, :D]
    return out.reshape(B, N, D)


if __name__ == "__main__":
    # PatchEmbedding(num_channels=4, patch_size=4, embedding_dim=32, data_dims=2)
    B, C, H, W = 2, 4, 16, 16
    P = 4
    D = 32

    key = jax.random.PRNGKey(0)
    kx, kw, kb = jax.random.split(key, 3)
    x = jax.random.normal(kx, (B, C, H, W), dtype=jnp.float32)
    # Deterministic synthetic Conv2d parameters (shapes per nn.Conv2d(C, D, P, stride=P)).
    weight = jax.random.normal(kw, (D, C, P, P), dtype=jnp.float32) * 0.05
    bias = jax.random.normal(kb, (D,), dtype=jnp.float32) * 0.05

    out = patch_embedding_forward(x, weight, bias, P)
    out = jax.block_until_ready(out)

    Hp, Wp = H // P, W // P
    N = Hp * Wp
    assert out.shape == (B, N, D)

    # 1) Same-precision (bf16 operands, f32 accumulate) pure-JAX reference -> tight check.
    xp = jnp.transpose(x.reshape(B, C, Hp, P, Wp, P), (0, 2, 4, 1, 3, 5)).reshape(
        B * N, C * P * P
    )
    wf = weight.reshape(D, C * P * P).T
    ref_bf16 = (
        jnp.dot(
            xp.astype(jnp.bfloat16),
            wf.astype(jnp.bfloat16),
            preferred_element_type=jnp.float32,
        )
        + bias[None, :]
    ).reshape(B, N, D)
    assert jnp.allclose(out, ref_bf16, atol=1e-3, rtol=1e-3)

    # 2) Full-f32 Conv2d reference (PyTorch forward semantics) -> loose check covering
    #    the bf16 operand rounding.
    ref_conv = jax.lax.conv_general_dilated(
        x, weight, window_strides=(P, P), padding="VALID",
        dimension_numbers=("NCHW", "OIHW", "NCHW"),
    ) + bias.reshape(1, D, 1, 1)
    ref = jnp.transpose(ref_conv.reshape(B, D, N), (0, 2, 1))  # n (h w) l
    assert jnp.allclose(out, ref, atol=5e-2, rtol=5e-2)

    print("KERNEL_OK")
</pallas_src>

<mosaic_0001>
module attributes {stable_mosaic.version = 11 : i64} {
  func.func @_patch_embed_kernel_single(%arg0: i32, %arg1: memref<32x128xbf16, #tpu.memory_space<vmem>>, %arg2: memref<128x128xbf16, #tpu.memory_space<vmem>>, %arg3: memref<1x128xf32, #tpu.memory_space<vmem>>, %arg4: memref<32x128xf32, #tpu.memory_space<vmem>>) attributes {dimension_semantics = [#tpu.dimension_semantics<parallel>], iteration_bounds = array<i64: 1>, scalar_prefetch = 0 : i64, scratch_operands = 0 : i64, tpu.core_type = #tpu.core_type<tc>, window_params = [{transform_indices = @transform_0, window_bounds = array<i64: 32, 128>}, {pipeline_mode = #tpu.pipeline_mode<synchronous>, transform_indices = @transform_1, window_bounds = array<i64: 128, 128>}, {pipeline_mode = #tpu.pipeline_mode<synchronous>, transform_indices = @transform_2, window_bounds = array<i64: 1, 128>}, {transform_indices = @transform_3, window_bounds = array<i64: 32, 128>}]} {
    %c0 = arith.constant 0 : index
    %c0_0 = arith.constant 0 : index
    %0 = vector.load %arg1[%c0, %c0_0] : memref<32x128xbf16, #tpu.memory_space<vmem>>, vector<32x128xbf16>
    %c0_1 = arith.constant 0 : index
    %c0_2 = arith.constant 0 : index
    %1 = vector.load %arg2[%c0_1, %c0_2] : memref<128x128xbf16, #tpu.memory_space<vmem>>, vector<128x128xbf16>
    %cst = arith.constant dense<0.000000e+00> : vector<32x128xf32>
    %2 = tpu.matmul %0, %1, %cst {dimension_numbers = #tpu.dot_dimension_numbers<[1], [0], [0], [1], [0, 0, 1, 1], [], []>} : vector<32x128xbf16>, vector<128x128xbf16>, vector<32x128xf32> -> vector<32x128xf32>
    %c0_3 = arith.constant 0 : index
    %c0_4 = arith.constant 0 : index
    %3 = vector.load %arg3[%c0_3, %c0_4] : memref<1x128xf32, #tpu.memory_space<vmem>>, vector<1x128xf32>
    %4 = vector.broadcast %3 : vector<1x128xf32> to vector<32x128xf32>
    %5 = arith.addf %2, %4 : vector<32x128xf32>
    %c0_5 = arith.constant 0 : index
    %c0_6 = arith.constant 0 : index
    %6 = vector.load %arg4[%c0_5, %c0_6] : memref<32x128xf32, #tpu.memory_space<vmem>>, vector<32x128xf32>
    tpu.vector_store %arg4[%c0_5, %c0_6], %5 {strides = array<i32>} : memref<32x128xf32, #tpu.memory_space<vmem>>, vector<32x128xf32>,
    return
  }
  func.func @transform_0(%arg0: i32) -> (i32, i32) {
    %c0_i32 = arith.constant 0 : i32
    %c0_i32_0 = arith.constant 0 : i32
    return %arg0, %c0_i32 : i32, i32
  }
  func.func @transform_1(%arg0: i32) -> (i32, i32) {
    %c0_i32 = arith.constant 0 : i32
    %c0_i32_0 = arith.constant 0 : i32
    %c0_i32_1 = arith.constant 0 : i32
    return %c0_i32, %c0_i32_0 : i32, i32
  }
  func.func @transform_2(%arg0: i32) -> (i32, i32) {
    %c0_i32 = arith.constant 0 : i32
    %c0_i32_0 = arith.constant 0 : i32
    %c0_i32_1 = arith.constant 0 : i32
    return %c0_i32, %c0_i32_0 : i32, i32
  }
  func.func @transform_3(%arg0: i32) -> (i32, i32) {
    %c0_i32 = arith.constant 0 : i32
    %c0_i32_0 = arith.constant 0 : i32
    return %arg0, %c0_i32 : i32, i32
  }
}

</mosaic_0001>

<bundles_post_ra>
// kernel: tpu_custom_call.1
= control target key start
LH: loop header
LB: loop body
LE: loop exit
PB: predicated region body
PF: predicated region fallthrough
CT: control target
= control target key end

     0   :  { %8 = vsyncpa [#allocation3], 0  ;;  %s357_s0 = inlined_call_operand.hbm [shape: bf16[32,128], index: 0, kind: input, shape index: {}]   ;;  %s358_s1 = inlined_call_operand.hbm [shape: bf16[128,128], index: 1, kind: input, shape index: {}]   ;;  %s359_s2 = inlined_call_operand.vmem [shape: f32[1,128], index: 2, kind: input, shape index: {}]   ;;  %s360_s3 = inlined_call_operand.hbm [shape: f32[32,128], index: 3, kind: output, shape index: {}]  }
   0x1   :  { %9 = vsyncpa [#allocation6], 0 }
   0x2   :  { %10 = vsyncpa [#allocation4], 0  ;;  %s15_s14 = sshll.u32 %s357_s0, 4  ;;  %s318_s15 = smov [#allocation2]   ;;  %s16_s14 = int_to_ptr.hbm [resolvable:$true] %s15_s14 }
   0x3   :  { %s17_s16 = sshll.u32 %s318_s15, 4  ;;  %s28_s19 = sshll.u32 %s358_s1, 4  ;;  %s18_s16 = int_to_ptr.vmem [resolvable:$true] %s17_s16  ;;  %s29_s19 = int_to_ptr.hbm [resolvable:$true] %s28_s19 }
   0x4   :  { %s319_s20 = smov 64   ;;  %s320_s21 = smov 4  }
   0x5   :  { %23 = dma.hbm_to_vmem [thread:$0]  %s16_s14, 256, %s18_s16, [#allocation3], %s319_s20, %s319_s20, %s320_s21  }
   0x6   :  { %s321_s22 = smov [#allocation5]  }
   0x7   :  { %s30_s23 = sshll.u32 %s321_s22, 4  ;;  %s31_s23 = int_to_ptr.vmem [resolvable:$true] %s30_s23 }
   0x8   :  { %36 = dma.hbm_to_vmem [thread:$0]  %s29_s19, 1024, %s31_s23, [#allocation6], %s319_s20, %s319_s20, %s320_s21  }
   0x9   :  { %312 = dma.done.wait [#allocation3], 256  }
   0xa   :  { %313 = vsyncadd [#allocation3], 4294967040 }
   0xb   :  { %314 = dma.done.wait [#allocation6], 1024  }
   0xc   :  { %315 = vsyncadd [#allocation6], 4294966272  ;;  %v223_v0 = vld [vmem:[#allocation5 + $0x38] sm:$0xff]  ;;  %v222_v1 = vld [vmem:[#allocation5 + $0x30] sm:$0xff]  ;;  %s322_s24 = smov [#allocation7]   ;;  %s160_s28 = sshll.u32 %s360_s3, 4  ;;  %s161_s28 = int_to_ptr.hbm [resolvable:$true] %s160_s28 }
   0xd   :  { %131 = vmatpush.bf16.msra.mxu0 %v223_v0  ;;  %224 = vmatpush.bf16.msra.mxu1 %v223_v0  ;;  %v221_v2 = vld [vmem:[#allocation5 + $0x28] sm:$0xff]  ;;  %v220_v3 = vld [vmem:[#allocation5 + $0x20] sm:$0xff]  ;;  %v219_v4 = vld [vmem:[#allocation5 + $0x18] sm:$0xff]  ;;  %s158_s25 = sshll.u32 %s322_s24, 4  ;;  %s324_s29 = smov 8   ;;  %s159_s25 = int_to_ptr.vmem [resolvable:$true] %s158_s25 }
   0xe   :  { %v218_v5 = vld [vmem:[#allocation5 + $0x10] sm:$0xff]  ;;  %v217_v6 = vld [vmem:[#allocation5 + $0x8] sm:$0xff]  ;;  %v216_v7 = vld [vmem:[#allocation5] sm:$0xff] }
   0xf   :  { %v214_v8 = vld [vmem:[#allocation2] sm:$0xff]  ;;  %v215_v9 = vld [vmem:[#allocation2 + $0x8] sm:$0xff] }
  0x10   :  { %v239_v10 = vld [vmem:[%s359_s2] ss:$0 sm:$0xff]  ;;  %s323_s2 = smov 128  }
  0x11   :  { %132 = vmatpush.bf16.msra.mxu0 %v222_v1  ;;  %225 = vmatpush.bf16.msra.mxu1 %v222_v1 }
  0x15   :  { %133 = vmatpush.bf16.msra.mxu0 %v221_v2  ;;  %226 = vmatpush.bf16.msra.mxu1 %v221_v2 }
  0x19   :  { %134 = vmatpush.bf16.msra.mxu0 %v220_v3  ;;  %227 = vmatpush.bf16.msra.mxu1 %v220_v3 }
  0x1d   :  { %135 = vmatpush.bf16.msra.mxu0 %v219_v4  ;;  %228 = vmatpush.bf16.msra.mxu1 %v219_v4 }
  0x21   :  { %136 = vmatpush.bf16.msra.mxu0 %v218_v5  ;;  %229 = vmatpush.bf16.msra.mxu1 %v218_v5 }
  0x25   :  { %137 = vmatpush.bf16.msra.mxu0 %v217_v6  ;;  %230 = vmatpush.bf16.msra.mxu1 %v217_v6 }
  0x29   :  { %138 = vmatpush.bf16.msra.mxu0 %v216_v7  ;;  %231 = vmatpush.bf16.msra.mxu1 %v216_v7 }
  0x2c   :  { %139 = vmatmul.bf16.vlgmr.msra.gmra.mxu0 %v214_v8  ;;  %144 = vmatmul.bf16.vlgmr.msra.gmra.mxu1 %v215_v9 }
  0xa9   :  { %v140_v11 = vpop.f32.mrf.mxu0  ;;  %v145_v12 = vpop.f32.mrf.mxu1 }
  0xaa   :  { %v141_v13 = vadd.f32 %v239_v10, %v140_v11  ;;  %v146_v14 = vadd.f32 %v239_v10, %v145_v12 }
  0xac   :  { %150 = vst [vmem:[#allocation7] sm:$0xff] %v141_v13 }
  0xad   :  { %152 = vst [vmem:[#allocation7 + $0x10] sm:$0xff] %v146_v14 }
  0xb1   :  { %v142_v15 = vpop.f32.mrf.mxu0  ;;  %v147_v16 = vpop.f32.mrf.mxu1 }
  0xb2   :  { %v143_v17 = vadd.f32 %v239_v10, %v142_v15  ;;  %v148_v18 = vadd.f32 %v239_v10, %v147_v16 }
  0xb4   :  { %151 = vst [vmem:[#allocation7 + $0x8] sm:$0xff] %v143_v17 }
  0xb5   :  { %153 = vst [vmem:[#allocation7 + $0x18] sm:$0xff] %v148_v18 }
  0xb6   :  { %166 = dma.vmem_to_hbm [thread:$0]  %s159_s25, 512, %s161_s28, [#allocation4], %s323_s2, %s323_s2, %s324_s29  }
  0xb7   :  { %316 = dma.done.wait [#allocation4], 512  }
  0xb8   :  { %317 = vsyncadd [#allocation4], 4294966784 }
  0xb9   :  { %171 = vsyncpa [#allocation3], 1 }
  0xba   :  { %172 = vsyncpa [#allocation6], 1 }
  0xbb   :  { %173 = vsyncpa [#allocation4], 1 }

</bundles_post_ra>
